<compile_context>
chip_gen: v7x
topology: tpu7x:2x2x1
jax: 0.10.0
libtpu: 0.0.40
codegen_flags: <defaults>
</compile_context>

<pallas_src>
import jax
import jax.numpy as jnp
from jax.experimental import pallas as pl
from jax.experimental.pallas import tpu as pltpu

# The module constructs nn.GroupNorm(1, N, eps=1e-08) explicitly.
EPS = 1e-8


def make_interp_matrix(t_in, t_out, dtype=jnp.float32):
    """Dense [t_in, t_out] matrix reproducing
    F.interpolate(mode='linear', align_corners=False) (the module's default)."""
    scale = t_in / t_out
    d = jnp.arange(t_out, dtype=jnp.float32)
    src = jnp.clip((d + 0.5) * scale - 0.5, 0.0, float(t_in - 1))
    i0 = jnp.floor(src).astype(jnp.int32)
    i1 = jnp.minimum(i0 + 1, t_in - 1)
    w1 = src - i0.astype(jnp.float32)
    w0 = 1.0 - w1
    rows = jnp.arange(t_in)[:, None]
    a = (w0[None, :] * (rows == i0[None, :]).astype(jnp.float32)
         + w1[None, :] * (rows == i1[None, :]).astype(jnp.float32))
    return a.astype(dtype)


def prepare_separator_params(params, tv, d, *, mxu_dtype=jnp.bfloat16):
    """Fold GroupNorm affine + bottleneck conv + av_conv(audio half) into one
    weight/bias and pre-cast every MXU operand.  Done ONCE, outside the
    per-call path.

        y     = w_bn @ (xn * gamma + beta)
        audio = w_av[:, :B] @ y
              = (w_av_x @ (w_bn * gamma[None, :])) @ xn
                + (w_av_x @ (w_bn @ beta))

    Valid only while the bottleneck output `y` is not consumed separately
    (the masknet path is TODO).
    """
    gamma = params["gamma"].astype(jnp.float32)
    beta = params["beta"].astype(jnp.float32)
    w_bn = params["w_bn"].astype(jnp.float32)     # [B, N]
    w_av = params["w_av"].astype(jnp.float32)     # [C, B+E]
    b_av = params["b_av"].astype(jnp.float32)     # [C]
    b = w_bn.shape[0]
    c = w_av.shape[0]

    w_av_x = w_av[:, :b]                          # [C, B]  audio half of av_conv
    w_av_v = w_av[:, b:]                          # [C, E]  visual half of av_conv
    w_eff = w_av_x @ (w_bn * gamma[None, :])      # folded [C, N]
    bias_eff = w_av_x @ (w_bn @ beta) + b_av      # folded [C]

    return {
        "w_eff": w_eff.astype(mxu_dtype),
        "w_av_v": w_av_v.astype(mxu_dtype),
        "interp": make_interp_matrix(tv, d, dtype=mxu_dtype),    # [Tv, D]
        "bias_eff": bias_eff.reshape(c, 1).astype(jnp.float32),  # keep f32
    }


def separator_kernel(x_ref, v_ref, w_eff_ref, w_av_v_ref, interp_ref, b_ref,
                     o_ref, xn_scr):
    """One grid step = MB batch elements.

    x_ref:      [MB, N, D]   audio features (bf16 I/O)
    v_ref:      [MB, E, Tv]  visual/reference embedding (bf16 I/O)
    w_eff_ref:  [C, N]       folded (affine . bottleneck . av_conv_x), bf16
    w_av_v_ref: [C, E]       av_conv visual half, bf16
    interp_ref: [Tv, D]      linear-interpolation matrix, bf16
    b_ref:      [C, 1]       folded bias, f32
    o_ref:      [MB, C, D]   output
    xn_scr:     [N, MB*D]    VMEM scratch holding normalized bf16 slabs
    """
    mb, n, d = x_ref.shape
    tv = interp_ref.shape[0]
    inv_count = 1.0 / float(n * d)

    # Constants: hoisted reads (their index_map is constant across the grid).
    w_eff = w_eff_ref[...]
    w_av_v = w_av_v_ref[...]
    interp = interp_ref[...]
    bias = b_ref[...]                       # [C, 1], lane-broadcasts over MB*D

    # Pass 1: per-element GroupNorm(num_groups=1) with ONE-PASS stats
    # (sum + sum-of-squares), all reductions in f32.  Normalized bf16 slabs
    # are packed side by side so the audio matmul below is a single wide op.
    for b in range(mb):
        xb = x_ref[b].astype(jnp.float32)               # [N, D]
        s = jnp.sum(xb)
        ss = jnp.sum(xb * xb)
        mean = s * inv_count
        var = jnp.maximum(ss * inv_count - mean * mean, 0.0)
        rstd = jax.lax.rsqrt(var + EPS)
        xn_scr[:, b * d:(b + 1) * d] = ((xb - mean) * rstd).astype(xn_scr.dtype)

    # Batched audio path: folded (affine . bottleneck . av_conv_audio) weight,
    # lane dimension MB*D (wide MXU fill), f32 accumulation; bias added ONCE.
    audio = jnp.dot(w_eff, xn_scr[...],
                    preferred_element_type=jnp.float32)             # [C, MB*D]
    audio = audio + bias

    # Batched visual projection: concat per-element [E, Tv] slabs along lanes,
    # one matmul, then the tiny per-element interp matmul.
    v_cat = jnp.concatenate(
        [v_ref[b].astype(w_av_v.dtype) for b in range(mb)], axis=1)  # [E, MB*Tv]
    t_all = jnp.dot(w_av_v, v_cat,
                    preferred_element_type=jnp.float32)              # [C, MB*Tv]
    t_all = t_all.astype(interp.dtype)

    for b in range(mb):
        vis_b = jnp.dot(t_all[:, b * tv:(b + 1) * tv], interp,
                        preferred_element_type=jnp.float32)          # [C, D]
        o_ref[b] = (audio[:, b * d:(b + 1) * d] + vis_b).astype(o_ref.dtype)


def _vmem_capacity_bytes(default=64 << 20):
    try:
        info = pltpu.get_tpu_info()
        cap = getattr(info, "vmem_capacity_bytes", None)
        if cap:
            return int(cap)
    except Exception:
        pass
    return default


def _pick_batch_block(m, per_elem_bytes, *, cap_bytes, min_grid):
    """Largest divisor of the batch whose per-step tile fits under cap while
    keeping the grid at least `min_grid` steps long (pipelining + v7x 2-TC
    sharding); prefer even grid lengths."""
    def candidates(need_even):
        out = []
        for c in range(1, m + 1):
            if m % c != 0:
                continue
            g = m // c
            if g < min_grid:
                continue
            if need_even and g % 2 != 0:
                continue
            if c * per_elem_bytes > cap_bytes:
                continue
            out.append(c)
        return out

    for need_even in (True, False):
        cands = candidates(need_even)
        if cands:
            return max(cands)
    return 1


def separator_forward(x, visual, prep, *, mb=None,
                      io_dtype=jnp.bfloat16, out_dtype=jnp.bfloat16):
    """x: [M, N, D] audio features, visual: [M, E, Tv] reference embedding.
    `prep` is the output of prepare_separator_params (folded + pre-cast).
    Inputs/outputs are carried in bf16 (kernel is HBM-bound); stats/accum f32."""
    m, n, d = x.shape
    e, tv = visual.shape[1], visual.shape[2]
    c = prep["w_eff"].shape[0]

    x = x.astype(io_dtype)
    visual = visual.astype(io_dtype)
    in_bytes = jnp.dtype(io_dtype).itemsize
    out_bytes = jnp.dtype(out_dtype).itemsize
    mxu_bytes = jnp.dtype(prep["w_eff"].dtype).itemsize

    w_eff = prep["w_eff"]
    w_av_v = prep["w_av_v"]
    interp = prep["interp"]
    bias = prep["bias_eff"]

    vmem_cap = _vmem_capacity_bytes()
    # Per-batch-element footprint: in/out tiles + bf16 xn scratch + f32 slack.
    per_elem = (n * d * in_bytes + e * tv * in_bytes + c * d * out_bytes
                + n * d * mxu_bytes + 4 * c * d * 4)
    if mb is None:
        mb = _pick_batch_block(m, per_elem,
                               cap_bytes=max(1 << 20, vmem_cap // 8),
                               min_grid=min(m, 4))
    assert m % mb == 0, (m, mb)

    const_bytes = (w_eff.size * w_eff.dtype.itemsize
                   + w_av_v.size * w_av_v.dtype.itemsize
                   + interp.size * interp.dtype.itemsize
                   + bias.size * bias.dtype.itemsize)
    tile_bytes = mb * (n * d * in_bytes + e * tv * in_bytes + c * d * out_bytes)
    scratch_bytes = n * mb * d * mxu_bytes
    interm_bytes = 4 * mb * c * d * 4
    vmem_limit = int(min(vmem_cap,
                         max(16 << 20,
                             2 * (2 * tile_bytes + const_bytes)
                             + scratch_bytes + interm_bytes)))

    flops = m * (2 * c * n * d + 2 * c * e * tv + 2 * c * tv * d + 8 * n * d)
    bytes_accessed = (m * n * d * in_bytes + m * e * tv * in_bytes
                      + m * c * d * out_bytes + const_bytes)

    return pl.pallas_call(
        separator_kernel,
        out_shape=jax.ShapeDtypeStruct((m, c, d), out_dtype),
        grid_spec=pltpu.PrefetchScalarGridSpec(
            num_scalar_prefetch=0,
            grid=(m // mb,),
            in_specs=[
                pl.BlockSpec((mb, n, d), lambda i: (i, 0, 0)),    # x (bf16)
                pl.BlockSpec((mb, e, tv), lambda i: (i, 0, 0)),   # visual (bf16)
                pl.BlockSpec((c, n), lambda i: (0, 0)),           # folded W
                pl.BlockSpec((c, e), lambda i: (0, 0)),           # av_conv (visual)
                pl.BlockSpec((tv, d), lambda i: (0, 0)),          # interp matrix
                pl.BlockSpec((c, 1), lambda i: (0, 0)),           # folded bias
            ],
            out_specs=pl.BlockSpec((mb, c, d), lambda i: (i, 0, 0)),
            scratch_shapes=[pltpu.VMEM((n, mb * d), prep["w_eff"].dtype)],
        ),
        compiler_params=pltpu.CompilerParams(
            dimension_semantics=("parallel",),
            vmem_limit_bytes=vmem_limit,
        ),
        cost_estimate=pl.CostEstimate(
            flops=int(flops),
            transcendentals=int(m),
            bytes_accessed=int(bytes_accessed)),
    )(x, visual, w_eff, w_av_v, interp, bias)


def separator_ref(x, visual, params):
    """Pure-JAX f32 reference matching the PyTorch semantics (pre-masknet)."""
    m, n, d = x.shape
    xf = x.astype(jnp.float32)
    mean = jnp.mean(xf, axis=(1, 2), keepdims=True)
    var = jnp.mean(jnp.square(xf - mean), axis=(1, 2), keepdims=True)
    xn = (xf - mean) * jax.lax.rsqrt(var + EPS)
    xn = xn * params["gamma"][None, :, None] + params["beta"][None, :, None]
    y = jnp.einsum("oi,mid->mod", params["w_bn"], xn)
    a = make_interp_matrix(visual.shape[2], d)
    v_up = jnp.einsum("met,td->med", visual.astype(jnp.float32), a)
    cat = jnp.concatenate([y, v_up], axis=1)
    out = jnp.einsum("oi,mid->mod", params["w_av"], cat)
    return out + params["b_av"][None, :, None]


if __name__ == "__main__":
    # M=batch, N=encoder_out_nchannels, D=audio frames, E=emb_size, Tv=visual frames
    M, N, D, E, Tv = 2, 64, 128, 16, 32

    key = jax.random.PRNGKey(0)
    k_x, k_v, k_g, k_b, k_bn, k_av, k_avb = jax.random.split(key, 7)

    # bf16 I/O: upstream encoder / visual frontend are assumed to emit bf16.
    x = jax.random.normal(k_x, (M, N, D), dtype=jnp.float32).astype(jnp.bfloat16)
    visual = jax.random.normal(k_v, (M, E, Tv), dtype=jnp.float32).astype(jnp.bfloat16)

    params = {
        "gamma": 1.0 + 0.1 * jax.random.normal(k_g, (N,), dtype=jnp.float32),
        "beta": 0.1 * jax.random.normal(k_b, (N,), dtype=jnp.float32),
        "w_bn": 0.1 * jax.random.normal(k_bn, (N, N), dtype=jnp.float32),
        "w_av": 0.1 * jax.random.normal(k_av, (N, N + E), dtype=jnp.float32),
        "b_av": 0.1 * jax.random.normal(k_avb, (N,), dtype=jnp.float32),
    }

    # Constants (folded weights, bf16 casts, interp matrix) built exactly once.
    prep = prepare_separator_params(params, Tv, D)

    out = separator_forward(x, visual, prep)
    out = jax.block_until_ready(out)

    ref = separator_ref(x, visual, params)
    assert out.shape == (M, N, D)
    max_err = float(jnp.max(jnp.abs(out.astype(jnp.float32) - ref)))
    # bf16 I/O + bf16 MXU operands (f32 accumulation) => looser tolerance.
    assert jnp.allclose(out.astype(jnp.float32), ref, atol=5e-2, rtol=5e-2), max_err

    print("KERNEL_OK")
</pallas_src>

<mosaic_0001>
module attributes {stable_mosaic.version = 11 : i64} {
  func.func @separator_kernel(%arg0: i32, %arg1: memref<1x64x128xbf16, #tpu.memory_space<vmem>>, %arg2: memref<1x16x32xbf16, #tpu.memory_space<vmem>>, %arg3: memref<64x64xbf16, #tpu.memory_space<vmem>>, %arg4: memref<64x16xbf16, #tpu.memory_space<vmem>>, %arg5: memref<32x128xbf16, #tpu.memory_space<vmem>>, %arg6: memref<64x1xf32, #tpu.memory_space<vmem>>, %arg7: memref<1x64x128xbf16, #tpu.memory_space<vmem>>, %arg8: memref<64x128xbf16, #tpu.memory_space<vmem>>) attributes {dimension_semantics = [#tpu.dimension_semantics<parallel>], iteration_bounds = array<i64: 2>, scalar_prefetch = 0 : i64, scratch_operands = 1 : i64, tpu.core_type = #tpu.core_type<tc>, window_params = [{transform_indices = @transform_0, window_bounds = array<i64: 1, 64, 128>}, {transform_indices = @transform_1, window_bounds = array<i64: 1, 16, 32>}, {pipeline_mode = #tpu.pipeline_mode<synchronous>, transform_indices = @transform_2, window_bounds = array<i64: 64, 64>}, {pipeline_mode = #tpu.pipeline_mode<synchronous>, transform_indices = @transform_3, window_bounds = array<i64: 64, 16>}, {pipeline_mode = #tpu.pipeline_mode<synchronous>, transform_indices = @transform_4, window_bounds = array<i64: 32, 128>}, {pipeline_mode = #tpu.pipeline_mode<synchronous>, transform_indices = @transform_5, window_bounds = array<i64: 64, 1>}, {transform_indices = @transform_6, window_bounds = array<i64: 1, 64, 128>}]} {
    %c0 = arith.constant 0 : index
    %c0_0 = arith.constant 0 : index
    %0 = vector.load %arg3[%c0, %c0_0] : memref<64x64xbf16, #tpu.memory_space<vmem>>, vector<64x64xbf16>
    %c0_1 = arith.constant 0 : index
    %c0_2 = arith.constant 0 : index
    %1 = vector.load %arg4[%c0_1, %c0_2] : memref<64x16xbf16, #tpu.memory_space<vmem>>, vector<64x16xbf16>
    %c0_3 = arith.constant 0 : index
    %c0_4 = arith.constant 0 : index
    %2 = vector.load %arg5[%c0_3, %c0_4] : memref<32x128xbf16, #tpu.memory_space<vmem>>, vector<32x128xbf16>
    %c0_5 = arith.constant 0 : index
    %c0_6 = arith.constant 0 : index
    %3 = vector.load %arg6[%c0_5, %c0_6] : memref<64x1xf32, #tpu.memory_space<vmem>>, vector<64x1xf32>
    %c0_7 = arith.constant 0 : index
    %c0_8 = arith.constant 0 : index
    %c0_9 = arith.constant 0 : index
    %4 = vector.load %arg1[%c0_7, %c0_8, %c0_9] : memref<1x64x128xbf16, #tpu.memory_space<vmem>>, vector<1x64x128xbf16>
    %5 = vector.shape_cast %4 : vector<1x64x128xbf16> to vector<64x128xbf16>
    %6 = arith.extf %5 : vector<64x128xbf16> to vector<64x128xf32>
    %7 = vector.shape_cast %6 : vector<64x128xf32> to vector<1x64x128xf32>
    %cst = arith.constant dense<0.000000e+00> : vector<1xf32>
    %8 = vector.multi_reduction <add>, %7, %cst [1, 2] : vector<1x64x128xf32> to vector<1xf32>
    %9 = vector.shape_cast %8 : vector<1xf32> to vector<1x1x1xf32>
    %10 = vector.extract %9[0, 0, 0] : f32 from vector<1x1x1xf32>
    %11 = arith.mulf %6, %6 : vector<64x128xf32>
    %12 = vector.shape_cast %11 : vector<64x128xf32> to vector<1x64x128xf32>
    %cst_10 = arith.constant dense<0.000000e+00> : vector<1xf32>
    %13 = vector.multi_reduction <add>, %12, %cst_10 [1, 2] : vector<1x64x128xf32> to vector<1xf32>
    %14 = vector.shape_cast %13 : vector<1xf32> to vector<1x1x1xf32>
    %15 = vector.extract %14[0, 0, 0] : f32 from vector<1x1x1xf32>
    %cst_11 = arith.constant 1.22070313E-4 : f32
    %16 = arith.mulf %10, %cst_11 : f32
    %cst_12 = arith.constant 1.22070313E-4 : f32
    %17 = arith.mulf %15, %cst_12 : f32
    %18 = arith.mulf %16, %16 : f32
    %19 = arith.subf %17, %18 : f32
    %cst_13 = arith.constant 0.000000e+00 : f32
    %20 = arith.maximumf %19, %cst_13 : f32
    %cst_14 = arith.constant 9.99999993E-9 : f32
    %21 = arith.addf %20, %cst_14 : f32
    %22 = math.rsqrt %21 : f32
    %23 = vector.broadcast %16 : f32 to vector<64x128xf32>
    %24 = arith.subf %6, %23 : vector<64x128xf32>
    %25 = vector.broadcast %22 : f32 to vector<64x128xf32>
    %26 = arith.mulf %24, %25 : vector<64x128xf32>
    %27 = arith.truncf %26 : vector<64x128xf32> to vector<64x128xbf16>
    %c0_15 = arith.constant 0 : index
    %c0_16 = arith.constant 0 : index
    %28 = vector.load %arg8[%c0_15, %c0_16] : memref<64x128xbf16, #tpu.memory_space<vmem>>, vector<64x128xbf16>
    tpu.vector_store %arg8[%c0_15, %c0_16], %27 {strides = array<i32>} : memref<64x128xbf16, #tpu.memory_space<vmem>>, vector<64x128xbf16>,
    %c0_17 = arith.constant 0 : index
    %c0_18 = arith.constant 0 : index
    %29 = vector.load %arg8[%c0_17, %c0_18] : memref<64x128xbf16, #tpu.memory_space<vmem>>, vector<64x128xbf16>
    %cst_19 = arith.constant dense<0.000000e+00> : vector<64x128xf32>
    %30 = tpu.matmul %0, %29, %cst_19 {dimension_numbers = #tpu.dot_dimension_numbers<[1], [0], [0], [1], [0, 0, 1, 1], [], []>} : vector<64x64xbf16>, vector<64x128xbf16>, vector<64x128xf32> -> vector<64x128xf32>
    %31 = vector.broadcast %3 : vector<64x1xf32> to vector<64x128xf32>
    %32 = arith.addf %30, %31 : vector<64x128xf32>
    %c0_20 = arith.constant 0 : index
    %c0_21 = arith.constant 0 : index
    %c0_22 = arith.constant 0 : index
    %33 = vector.load %arg2[%c0_20, %c0_21, %c0_22] : memref<1x16x32xbf16, #tpu.memory_space<vmem>>, vector<1x16x32xbf16>
    %34 = vector.shape_cast %33 : vector<1x16x32xbf16> to vector<16x32xbf16>
    %cst_23 = arith.constant dense<0.000000e+00> : vector<64x32xf32>
    %35 = tpu.matmul %1, %34, %cst_23 {dimension_numbers = #tpu.dot_dimension_numbers<[1], [0], [0], [1], [0, 0, 1, 1], [], []>} : vector<64x16xbf16>, vector<16x32xbf16>, vector<64x32xf32> -> vector<64x32xf32>
    %36 = arith.truncf %35 : vector<64x32xf32> to vector<64x32xbf16>
    %cst_24 = arith.constant dense<0.000000e+00> : vector<64x128xf32>
    %37 = tpu.matmul %36, %2, %cst_24 {dimension_numbers = #tpu.dot_dimension_numbers<[1], [0], [0], [1], [0, 0, 1, 1], [], []>} : vector<64x32xbf16>, vector<32x128xbf16>, vector<64x128xf32> -> vector<64x128xf32>
    %38 = arith.addf %32, %37 : vector<64x128xf32>
    %39 = arith.truncf %38 : vector<64x128xf32> to vector<64x128xbf16>
    %c0_25 = arith.constant 0 : index
    %c0_26 = arith.constant 0 : index
    %c0_27 = arith.constant 0 : index
    %40 = vector.load %arg7[%c0_25, %c0_26, %c0_27] : memref<1x64x128xbf16, #tpu.memory_space<vmem>>, vector<1x64x128xbf16>
    %41 = vector.shape_cast %40 : vector<1x64x128xbf16> to vector<64x128xbf16>
    %42 = vector.shape_cast %39 : vector<64x128xbf16> to vector<1x64x128xbf16>
    tpu.vector_store %arg7[%c0_25, %c0_26, %c0_27], %42 {strides = array<i32>} : memref<1x64x128xbf16, #tpu.memory_space<vmem>>, vector<1x64x128xbf16>,
    return
  }
  func.func @transform_0(%arg0: i32) -> (i32, i32, i32) {
    %c0_i32 = arith.constant 0 : i32
    %c0_i32_0 = arith.constant 0 : i32
    %c0_i32_1 = arith.constant 0 : i32
    return %arg0, %c0_i32, %c0_i32_0 : i32, i32, i32
  }
  func.func @transform_1(%arg0: i32) -> (i32, i32, i32) {
    %c0_i32 = arith.constant 0 : i32
    %c0_i32_0 = arith.constant 0 : i32
    %c0_i32_1 = arith.constant 0 : i32
    return %arg0, %c0_i32, %c0_i32_0 : i32, i32, i32
  }
  func.func @transform_2(%arg0: i32) -> (i32, i32) {
    %c0_i32 = arith.constant 0 : i32
    %c0_i32_0 = arith.constant 0 : i32
    %c0_i32_1 = arith.constant 0 : i32
    return %c0_i32, %c0_i32_0 : i32, i32
  }
  func.func @transform_3(%arg0: i32) -> (i32, i32) {
    %c0_i32 = arith.constant 0 : i32
    %c0_i32_0 = arith.constant 0 : i32
    %c0_i32_1 = arith.constant 0 : i32
    return %c0_i32, %c0_i32_0 : i32, i32
  }
  func.func @transform_4(%arg0: i32) -> (i32, i32) {
    %c0_i32 = arith.constant 0 : i32
    %c0_i32_0 = arith.constant 0 : i32
    %c0_i32_1 = arith.constant 0 : i32
    return %c0_i32, %c0_i32_0 : i32, i32
  }
  func.func @transform_5(%arg0: i32) -> (i32, i32) {
    %c0_i32 = arith.constant 0 : i32
    %c0_i32_0 = arith.constant 0 : i32
    %c0_i32_1 = arith.constant 0 : i32
    return %c0_i32, %c0_i32_0 : i32, i32
  }
  func.func @transform_6(%arg0: i32) -> (i32, i32, i32) {
    %c0_i32 = arith.constant 0 : i32
    %c0_i32_0 = arith.constant 0 : i32
    %c0_i32_1 = arith.constant 0 : i32
    return %arg0, %c0_i32, %c0_i32_0 : i32, i32, i32
  }
}

</mosaic_0001>

<bundles_post_ra>
// kernel: tpu_custom_call.1
= control target key start
LH: loop header
LB: loop body
LE: loop exit
PB: predicated region body
PF: predicated region fallthrough
CT: control target
= control target key end

     0   :  { %11 = vsyncpa [#allocation4], 0  ;;  %s1568_s0 = inlined_call_operand.vmem [shape: bf16[2,64,128], index: 0, kind: input, shape index: {}]   ;;  %s1569_s1 = inlined_call_operand.hbm [shape: bf16[2,16,32], index: 1, kind: input, shape index: {}]   ;;  %s1570_s2 = inlined_call_operand.vmem [shape: bf16[64,64], index: 2, kind: input, shape index: {}]   ;;  %s1571_s3 = inlined_call_operand.vmem [shape: bf16[64,16], index: 3, kind: input, shape index: {}]   ;;  %s1572_s4 = inlined_call_operand.vmem [shape: bf16[32,128], index: 4, kind: input, shape index: {}]   ;;  %s1573_s5 = inlined_call_operand.vmem [shape: f32[64,1], index: 5, kind: input, shape index: {}]   ;;  %s1574_s6 = inlined_call_operand.hbm [shape: bf16[2,64,128], index: 6, kind: output, shape index: {}]  }
   0x1   :  { %13 = vsyncpa [#allocation4 + $0x1], 0 }
   0x2   :  { %14 = vsyncpa [#allocation5], 0 }
   0x3   :  { %16 = vsyncpa [#allocation5 + $0x1], 0  ;;  %s1286_s21 = smov 0   ;;  %s1288_s22 = smov 0  }
   0x4   :  { %s1290_s23 = smov 0   ;;  %s1292_s24 = smov 0  }
   0x5 LB: > { %s1307_s25 = sadd.s32 4294967295, %s1241_s24   ;;  %s899_s26 = sadd.s32 4294967294, %s1241_s24   ;;  %s1241_s24 = sphi %s1292_s24, %s1587_s24   ;;  %s1237_s23 = sphi %s1290_s23, %s1586_s23   ;;  %s1233_s22 = sphi %s1288_s22, %s1585_s22   ;;  %s1229_s21 = sphi %s1286_s21, %s1584_s21  }
   0x6   : > { %s1311_s27 = sadd.s32 1, %s1241_s24   ;;  %s55_s28 = sadd.s32 1, %s1237_s23 }
   0x7   : > { %s52_s29 = ssub.s32 %s1241_s24, %s1311_s27  ;;  %p62_p0 = scmp.ne.s32.totalorder %s1237_s23, %s1233_s22 }
   0x8   : > { %p53_p1 = scmp.eq.s32.totalorder %s52_s29, 0  ;;  %p63_p2 = scmp.eq.s32.totalorder %s1241_s24, 0 }
   0x9   : > { %p68_p3 = scmp.ne.s32.totalorder %s1233_s22, %s1229_s21  ;;  %p69_p4 = scmp.eq.s32.totalorder %s1307_s25, 0 }
   0xa   : > { %s1323_s30 = scalar_select %p53_p1, %s1237_s23, %s55_s28  }
   0xb   : > { %p1325_p5 = por %p63_p2, %p62_p0  ;;  %p1329_p6 = por %p69_p4, %p68_p3 }
   0xc   : > { %p176_p7 = scmp.eq.s32.totalorder %s1307_s25, 1  ;;  %p182_p8 = scmp.eq.s32.totalorder %s899_s26, 1 }
   0xd   : > { %p1090_p10 = scmp.lt.s32.totalorder %s1241_s24, 2  ;;  %s222_s11 = sand.u32 1, %s1237_s23  }
   0xe   : > { %p1336_p11 = por %p176_p7, %p62_p0  ;;  %p1340_p12 = por %p182_p8, %p68_p3 }
   0xf   : > { %s946_s12 = sshll.u32 %s1241_s24, 7  ;;  %s902_s13 = sshll.u32 %s222_s11, 3 }
  0x10   : > { %s1578_s9 = scalar_select %p1336_p11, 1, 0 }
  0x11   : > { %s1579_s10 = scalar_select %p1340_p12, 1, 0 }
  0x12   : > { %s1349_s16 = scalar_lea.hbm %s1569_s1, %s946_s12  ;;  %s226_s17 = scalar_lea.vmem [#allocation3], %s902_s13 }
  0x13   : > { %s233_s18 = sshll.u32 %s226_s17, 4  ;;  %p1353_p13 = pnand %p1090_p10, %p1325_p5  ;;  %s1357_s18 = int_to_ptr.vmem [resolvable:$true] %s233_s18 }
  0x14   : > { %s1359_s20 = scalar_lea.sflag [#allocation4], %s222_s11  ;;  %s1145_s26 = scalar_lea.hbm %s1349_s16, 128 }
  0x15   : > { %p1146_p0 = scmp.ne.s32.totalorder %s1349_s16, %s1145_s26  ;;  %p1147_p1 = pneg %p1353_p13 }
  0x16   : > { %s1150_s7 = scalar_lea.hbm %s1569_s1, 256  ;;  %p1151_p4 = scmp.lt.u32.totalorder %s1349_s16, %s1569_s1 }
  0x17   : > { %p1148_p2 = pnand %p1147_p1, %p1146_p0  ;;  %p1152_p5 = scmp.lt.u32.totalorder %s1150_s7, %s1145_s26 }
  0x18   : > { %p1154_p8 = scmp.lt.u32.totalorder %s1145_s26, %s1349_s16 }
  0x19   : > { %p1149_p3 = pneg %p1148_p2  ;;  %p1153_p7 = por %p1152_p5, %p1151_p4 }
  0x1b   : > { %p1155_p10 = por %p1154_p8, %p1153_p7 }
  0x1d   : > { %p1156_p9 = pnand %p1155_p10, %p1149_p3 }
  0x1f   : > { %1159 = shalt.err (!%p1156_p9)
}
  0x20   : > { %s1160_s11 = scalar_lea.vmem %s1357_s18, 128  ;;  %s1243_s14 = smov [#allocation3]  }
  0x21   : > { %p1161_p0 = scmp.ne.s32.totalorder %s1357_s18, %s1160_s11  ;;  %s1165_s15 = sshll.u32 %s1243_s14, 4  ;;  %s1166_s15 = int_to_ptr.vmem [resolvable:$false] %s1165_s15 }
  0x22   : > { %s1167_s17 = scalar_lea.vmem %s1166_s15, 256  ;;  %p1168_p11 = scmp.lt.s32.totalorder %s1357_s18, %s1166_s15 }
  0x23   : > { %p1163_p2 = pnand %p1161_p0, %p1147_p1  ;;  %p1169_p4 = scmp.lt.s32.totalorder %s1167_s17, %s1160_s11 }
  0x25   : > { %p1164_p12 = pneg %p1163_p2  ;;  %p1170_p5 = por %p1169_p4, %p1168_p11 }
  0x27   : > { %p1171_p7 = pnand %p1170_p5, %p1164_p12 }
  0x29   : > { %1174 = shalt.err (!%p1171_p7)
}
  0x2a   : > { %s1244_s26 = smov 64   ;;  %s1245_s28 = smov 4  }
  0x2b   : > { %1085 = dma.hbm_to_vmem [thread:$0]  (!%p1353_p13), %s1349_s16, 128, %s1357_s18, %s1359_s20, %s1244_s26, %s1244_s26, %s1245_s28  }
  0x2c   : > { %p905_p9 = scmp.ge.s32.totalorder %s1241_s24, 1  ;;  %p241_p1 = scmp.lt.s32.totalorder %s1241_s24, 3 }
  0x2e   : > { %p242_p3 = pnand %p905_p9, %p241_p1 }
  0x2f   : > { %s1390_s29 = sand.u32 (!%p242_p3), 1, %s1233_s22  }
  0x30   : > { %245 = sbr.rel (%p242_p3) target bundleno = 621 (0x26d), region = 44  ;;  %s906_s7 = sshll.u32 (!%p242_p3), %s1390_s29, 3 }
  0x31   : > { %s248_s12 = scalar_lea.sflag (!%p242_p3), [#allocation4], %s1390_s29  ;;  %s251_s13 = scalar_lea.vmem (!%p242_p3), [#allocation3], %s906_s7 }
  0x37   : > { %1220 = dma.done.wait (%p1329_p6), %s248_s12, 128  }
  0x38   : > { %1222 = vsyncadd (%p1329_p6), %s248_s12, 4294967168  ;;  %p285_p11 = scmp.lt.s32.totalorder %s1307_s25, 1  ;;  %v1132_v7 = vld [vmem:[%s251_s13] sm:$0xff]   ;;  %vm580_vm0 = vcmask 130048   ;;  %v1135_v18 = vld [vmem:[%s1571_s3 + $0x10] sm:$0xff]   ;;  %vm474_vm1 = vcmask 523264  }
  0x39   : > { %v1133_v12 = vld [vmem:[%s1571_s3] sm:$0xff]   ;;  %1034 = vmatprep.subr.bf16.mxu1 %v1132_v7  ;;  %v1134_v13 = vld [vmem:[%s1571_s3 + $0x8] sm:$0xff]   ;;  %v1136_v32 = vld [vmem:[%s1571_s3 + $0x18] sm:$0xff]   ;;  %v1246_v57 = vmov 0   ;;  %vm674_vm2 = vcmask 261120   ;;  %s1247_s13 = smov 0.0  }
  0x3a   : > { %s286_s16 = scalar_select %p285_p11, %s1307_s25, 1  ;;  %1035 = vmatpush3.bf16.msra.mxu1 %v1132_v7  ;;  %1036 = vmatprep.mubr.msk.bf16.mxu1 %vm580_vm0, %v1133_v12  ;;  %v1137_v52 = vld [vmem:[%s1572_s4] sm:$0xff]   ;;  %v1138_v54 = vld [vmem:[%s1572_s4 + $0x8] sm:$0xff]   ;;  %v313_v58 = vld [vmem:[%s1573_s5 + $0x10] sm:$0xff] }
  0x3b   : > { %1044 = vmatprep.subr.bf16.mxu1 %v1137_v52  ;;  %v1139_v55 = vld [vmem:[%s1570_s2] sm:$0xff]   ;;  %1130 = vset.pattern.permute.xlu1 %v1246_v57  ;;  %v312_v59 = vld [vmem:[%s1573_s5 + $0x8] sm:$0xff]  ;;  %v314_v60 = vld [vmem:[%s1573_s5 + $0x18] sm:$0xff]  ;;  %p1581_p12 = scmp.ne.s32.totalorder %s1578_s9, 0 }
  0x3c   : > { %s947_s18 = sshll.u32 %s286_s16, 5  ;;  %1026 = vmatprep.mubr.msk.bf16.mxu0 %vm474_vm1, %v1139_v55  ;;  %v311_v56 = vld [vmem:[%s1573_s5] sm:$0xff]  ;;  %1131 = vset.pattern.permute.xlu0 %v1246_v57  ;;  %v316_v62 = vld [vmem:[%s1573_s5 + $0x28] sm:$0xff]  ;;  %v317_v63 = vld [vmem:[%s1573_s5 + $0x30] sm:$0xff] }
  0x3d   : > { %s289_s11 = scalar_lea.vmem %s1568_s0, %s947_s18  ;;  %1037 = vmatmul.mubr.msk.bf16.vlgmr.msra.gmra.mrb[0].mxu1 %vm580_vm0, %v1134_v13  ;;  %416 = vperm.xlu1 %1130, %v311_v56   ;;  %v315_v61 = vld [vmem:[%s1573_s5 + $0x20] sm:$0xff] }
  0x3e   : > { %v958_v0 = vld [vmem:[%s289_s11] sm:$0xff]   ;;  %v993_v1 = vld [vmem:[%s289_s11 + $0x8] sm:$0xff]   ;;  %v994_v5 = vld [vmem:[%s289_s11 + $0x10] sm:$0xff]   ;;  %1040 = vmatprep.mubr.msk.bf16.mxu1 %vm580_vm0, %v1135_v18  ;;  %1045 = vmatpush3.bf16.msra.mxu1 %v1137_v52 }
  0x3f   : > { %v1403_v2 = vunpack.c.l.bf16 %v958_v0  ;;  %v1405_v3 = vunpack.c.h.bf16 %v958_v0  ;;  %v1407_v4 = vunpack.c.l.bf16 %v993_v1  ;;  %v1409_v6 = vunpack.c.h.bf16 %v993_v1  ;;  %v995_v19 = vld [vmem:[%s289_s11 + $0x18] sm:$0xff]   ;;  %1046 = vmatprep.subr.bf16.mxu1 %v1138_v54 }
  0x40   : > { %v1425_v14 = vunpack.c.l.bf16 %v994_v5  ;;  %v1434_v20 = vunpack.c.h.bf16 %v994_v5  ;;  %v1440_v24 = vunpack.c.l.bf16 %v995_v19  ;;  %v1446_v28 = vunpack.c.h.bf16 %v995_v19  ;;  %v318_v0 = vld [vmem:[%s1573_s5 + $0x38] sm:$0xff] }
  0x41   : > { %v335_v8 = vadd.f32 %v1405_v3, %v1403_v2  ;;  %v351_v9 = vmul.f32 %v1403_v2, %v1403_v2  ;;  %v352_v10 = vmul.f32 %v1405_v3, %v1405_v3  ;;  %v353_v11 = vmul.f32 %v1407_v4, %v1407_v4  ;;  %421 = vperm.xlu1 %1130, %v312_v59  }
  0x42   : > { %v354_v16 = vmul.f32 %v1409_v6, %v1409_v6  ;;  %v355_v22 = vmul.f32 %v1425_v14, %v1425_v14  ;;  %v356_v26 = vmul.f32 %v1434_v20, %v1434_v20  ;;  %v357_v30 = vmul.f32 %v1440_v24, %v1440_v24  ;;  %1047 = vmatpush3.bf16.msra.mxu1 %v1138_v54 }
  0x43   : > { %v336_v15 = vadd.f32 %v1407_v4, %v335_v8  ;;  %v359_v17 = vadd.f32 %v352_v10, %v351_v9  ;;  %v358_v34 = vmul.f32 %v1446_v28, %v1446_v28 }
  0x45   : > { %v337_v21 = vadd.f32 %v1409_v6, %v336_v15  ;;  %v360_v23 = vadd.f32 %v359_v17, %v353_v11  ;;  %1041 = vmatmul.mubr.msk.bf16.gmra.mrb[4].mxu1 %vm580_vm0, %v1136_v32  ;;  %431 = vperm.xlu1 %1130, %v314_v60  }
  0x47   : > { %v338_v25 = vadd.f32 %v1425_v14, %v337_v21  ;;  %v361_v27 = vadd.f32 %v360_v23, %v354_v16 }
  0x49   : > { %v339_v29 = vadd.f32 %v1434_v20, %v338_v25  ;;  %v362_v31 = vadd.f32 %v361_v27, %v355_v22  ;;  %436 = vperm.xlu1 %1130, %v315_v61  }
  0x4b   : > { %v340_v33 = vadd.f32 %v1440_v24, %v339_v29  ;;  %v363_v35 = vadd.f32 %v362_v31, %v356_v26 }
  0x4d   : > { %v341_v36 = vadd.f32 %v1446_v28, %v340_v33  ;;  %v364_v37 = vadd.f32 %v363_v35, %v357_v30  ;;  %441 = vperm.xlu1 %1130, %v316_v62  }
  0x4f   : > { %342 = vadd.xlane.f32.xlu0 %v341_v36  ;;  %v365_v38 = vadd.f32 %v364_v37, %v358_v34 }
  0x51   : > { %446 = vperm.xlu1 %1130, %v317_v63  }
  0x53   : > { %366 = vadd.xlane.f32.xlu0 %v365_v38 }
  0x55   : > { %451 = vperm.xlu1 %1130, %v318_v0  }
  0x69   : > { %426 = vperm.xlu0 %1131, %v313_v58  }
  0xdc   : > { %v343_v39 = vpop.xlane.xlu0 %342 }
  0xdd   : > { %v344_v40 = vrot.slane %v343_v39, 4 }
  0xdf   : > { %v345_v41 = vadd.f32 %v344_v40, %v343_v39 }
  0xe0   : > { %v367_v42 = vpop.xlane.xlu0 %366 }
  0xe1   : > { %v346_v43 = vrot.slane %v345_v41, 2  ;;  %v368_v44 = vrot.slane %v367_v42, 4 }
  0xe3   : > { %v369_v45 = vadd.f32 %v368_v44, %v367_v42  ;;  %v347_v46 = vadd.f32 %v346_v43, %v345_v41 }
  0xe5   : > { %v370_v47 = vrot.slane %v369_v45, 2  ;;  %v348_v48 = vrot.slane %v347_v46, 1 }
  0xe7   : > { %v349_v49 = vadd.f32 %v348_v48, %v347_v46  ;;  %v371_v50 = vadd.f32 %v370_v47, %v369_v45  ;;  %v417_v48 = vpop.permute.xlu1 %416 }
  0xe9   : > { %1072 = vpush %v349_v49  ;;  %v372_v51 = vrot.slane %v371_v50, 1 }
  0xeb   : > { %v373_v53 = vadd.f32 %v372_v51, %v371_v50  ;;  %v422_v49 = vpop.permute.xlu1 %421 }
  0xed   : > { %1074 = vpush %v373_v53  ;;  %v427_v53 = vpop.permute.xlu0 %426 }
  0xef   : > { %v432_v50 = vpop.permute.xlu1 %431 }
  0xf3   : > { %v437_v51 = vpop.permute.xlu1 %436 }
  0xf7   : > { %v442_v52 = vpop.permute.xlu1 %441 }
  0xfb   : > { %v447_v62 = vpop.permute.xlu1 %446 }
 0x110   : > { %v1038_v1 = vpop.f32.mrb[0].mxu1 }
 0x111   : > { %v627_v5 = vpop.f32.mrb[1].mxu1 }
 0x112   : > { %v1039_v7 = vpop.f32.mrb[2].mxu1 }
 0x113   : > { %v659_v8 = vpack.c.bf16 %v1039_v7, %v1038_v1  ;;  %v630_v9 = vpop.f32.mrb[3].mxu1 }
 0x114   : > { %v658_v10 = vpack.c.bf16 %v630_v9, %v627_v5 }
 0x116   : > { %1048 = vmatprep.mubr.msk.bf16.mxu1 %vm674_vm2, %v658_v10 }
 0x117   : > { %1049 = vmatmul.mubr.msk.bf16.vlgmr.msra.gmra.mrb[8].mxu1 %vm674_vm2, %v659_v8 }
 0x118   : > { %v1042_v11 = vpop.f32.mrb[4].mxu1 }
 0x119   : > { %v643_v12 = vpop.f32.mrb[5].mxu1 }
 0x11a   : > { %s1073_s15 = spop %1072  ;;  %v1043_v13 = vpop.f32.mrb[6].mxu1 }
 0x11b   : > { %s375_s17 = smul.f32 0.00012207031, %s1073_s15  ;;  %v661_v15 = vpack.c.bf16 %v1043_v13, %v1042_v11  ;;  %v646_v16 = vpop.f32.mrb[7].mxu1 }
 0x11c   : > { %v660_v17 = vpack.c.bf16 %v646_v16, %v643_v12  ;;  %v452_v12 = vpop.permute.xlu1 %451 }
 0x11d   : > { %s377_s26 = smul.f32 %s375_s17, %s375_s17  ;;  %v384_v21 = vstv %s375_s17 }
 0x11e   : > { %s1075_s28 = spop %1074  ;;  %1052 = vmatprep.mubr.msk.bf16.mxu1 %vm674_vm2, %v660_v17  ;;  %v385_v22 = vsub.f32 %v1403_v2, %v384_v21  ;;  %v386_v23 = vsub.f32 %v1405_v3, %v384_v21  ;;  %v387_v25 = vsub.f32 %v1407_v4, %v384_v21  ;;  %v388_v26 = vsub.f32 %v1409_v6, %v384_v21 }
 0x11f   : > { %s376_s7 = smul.f32 0.00012207031, %s1075_s28  ;;  %1053 = vmatmul.mubr.msk.bf16.gmra.mrb[12].mxu1 %vm674_vm2, %v661_v15  ;;  %v389_v34 = vsub.f32 %v1425_v14, %v384_v21  ;;  %v390_v35 = vsub.f32 %v1434_v20, %v384_v21  ;;  %v391_v3 = vsub.f32 %v1440_v24, %v384_v21  ;;  %v392_v4 = vsub.f32 %v1446_v28, %v384_v21  ;;  %v1140_v14 = vld [vmem:[%s1570_s2 + $0x8] sm:$0xff]   ;;  %v1141_v20 = vld [vmem:[%s1570_s2 + $0x10] sm:$0xff]   ;;  %v1142_v24 = vld [vmem:[%s1570_s2 + $0x18] sm:$0xff]  }
 0x121   : > { %s378_s12 = ssub.f32 %s376_s7, %s377_s26  ;;  %s907_s26 = sshll.u32 %s1390_s29, 5 }
 0x122   : > { %s284_s28 = scalar_lea.vmem [#allocation6], %s907_s26 }
 0x123   : > { %s379_s16 = smax.f32 %s1247_s13, %s378_s12  ;;  %s814_s7 = sshll.u32 %s284_s28, 4  ;;  %s1519_s7 = int_to_ptr.vmem [resolvable:$true] %s814_s7 }
 0x124   : > { %s380_s18 = sadd.f32 1e-08, %s379_s16  ;;  %s956_s12 = sshll.u32 %s1307_s25, 9 }
 0x125   : > { %s1175_s20 = scalar_lea.vmem %s1519_s7, 512  ;;  %s1248_s25 = smov [#allocation6]  }
 0x126   : > { %v381_v18 = vstv %s380_s18  ;;  %s1524_s18 = scalar_lea.hbm %s1574_s6, %s956_s12  ;;  %p1176_p6 = scmp.ne.s32.totalorder %s1519_s7, %s1175_s20 }
 0x127   : > { %1143 = vrsqrt.f32 %v381_v18  ;;  %s1179_s11 = sshll.u32 %s1248_s25, 4  ;;  %s1180_s11 = int_to_ptr.vmem [resolvable:$false] %s1179_s11 }
 0x128   : > { %p1177_p13 = pnand %p1176_p6, %p1581_p12  ;;  %s1181_s8 = scalar_lea.vmem %s1180_s11, 1024 }
 0x129   : > { %p1182_p10 = scmp.lt.s32.totalorder %s1519_s7, %s1180_s11  ;;  %p1183_p0 = scmp.lt.s32.totalorder %s1181_s8, %s1175_s20 }
 0x12a   : > { %p1178_p8 = pneg %p1177_p13 }
 0x12b   : > { %p1184_p2 = por %p1183_p0, %p1182_p10 }
 0x12d   : > { %p1185_p4 = pnand %p1184_p2, %p1178_p8 }
 0x131   : > { %v1144_v19 = vpop.eup %1143 }
 0x132   : > { %1076 = vpush %v1144_v19 }
 0x163   : > { %s1077_s19 = spop %1076 }
 0x164   : > { %v393_v27 = vstv %s1077_s19  ;;  %s801_s19 = scalar_lea.sflag [#allocation5], %s1390_s29 }
 0x165   : > { %v394_v29 = vmul.f32 %v393_v27, %v385_v22  ;;  %v395_v30 = vmul.f32 %v393_v27, %v386_v23  ;;  %v396_v31 = vmul.f32 %v393_v27, %v387_v25  ;;  %v397_v32 = vmul.f32 %v393_v27, %v388_v26 }
 0x166   : > { %v398_v37 = vmul.f32 %v393_v27, %v389_v34  ;;  %v399_v2 = vmul.f32 %v393_v27, %v390_v35  ;;  %v400_v38 = vmul.f32 %v393_v27, %v391_v3  ;;  %v401_v39 = vmul.f32 %v393_v27, %v392_v4 }
 0x167   : > { %v402_v33 = vpack.c.bf16 %v395_v30, %v394_v29  ;;  %v403_v36 = vpack.c.bf16 %v397_v32, %v396_v31 }
 0x168   : > { %v404_v6 = vpack.c.bf16 %v399_v2, %v398_v37  ;;  %v405_v40 = vpack.c.bf16 %v401_v39, %v400_v38 }
 0x169   : > { %1018 = vmatprep.subr.bf16.mxu0 %v402_v33 }
 0x16a   : > { %1019 = vmatpush3.bf16.msra.mxu0 %v402_v33 }
 0x16b   : > { %1020 = vmatprep.subr.bf16.mxu0 %v403_v36 }
 0x16e   : > { %1021 = vmatpush3.bf16.msra.mxu0 %v403_v36 }
 0x16f   : > { %1022 = vmatprep.subr.bf16.mxu0 %v404_v6 }
 0x172   : > { %1023 = vmatpush3.bf16.msra.mxu0 %v404_v6 }
 0x173   : > { %1024 = vmatprep.subr.bf16.mxu0 %v405_v40 }
 0x176   : > { %1025 = vmatpush3.bf16.msra.mxu0 %v405_v40 }
 0x179   : > { %1027 = vmatmul.mubr.msk.bf16.vlgmr.msra.gmra.mrb[0].mxu0 %vm474_vm1, %v1140_v14 }
 0x17a   : > { %1030 = vmatprep.mubr.msk.bf16.mxu0 %vm474_vm1, %v1141_v20 }
 0x181   : > { %1031 = vmatmul.mubr.msk.bf16.gmra.mrb[4].mxu0 %vm474_vm1, %v1142_v24 }
 0x1ea   : > { %v1050_v28 = vpop.f32.mrb[8].mxu1 }
 0x1eb   : > { %v721_v41 = vpop.f32.mrb[9].mxu1 }
 0x1ec   : > { %v1051_v42 = vpop.f32.mrb[10].mxu1 }
 0x1ed   : > { %v724_v43 = vpop.f32.mrb[11].mxu1 }
 0x1f2   : > { %v1054_v44 = vpop.f32.mrb[12].mxu1 }
 0x1f3   : > { %v737_v45 = vpop.f32.mrb[13].mxu1 }
 0x1f4   : > { %v1055_v46 = vpop.f32.mrb[14].mxu1 }
 0x1f5   : > { %v740_v47 = vpop.f32.mrb[15].mxu1 }
 0x24c   : > { %v1028_v54 = vpop.f32.mrb[0].mxu0 }
 0x24d   : > { %v530_v55 = vadd.f32 %v1028_v54, %v427_v53  ;;  %v521_v56 = vpop.f32.mrb[1].mxu0 }
 0x24e   : > { %v522_v57 = vadd.f32 %v521_v56, %v417_v48  ;;  %v1029_v58 = vpop.f32.mrb[2].mxu0 }
 0x24f   : > { %v754_v59 = vadd.f32 %v1050_v28, %v530_v55  ;;  %v533_v60 = vadd.f32 %v1029_v58, %v432_v50  ;;  %v524_v61 = vpop.f32.mrb[3].mxu0 }
 0x250   : > { %v752_v63 = vadd.f32 %v721_v41, %v522_v57  ;;  %v525_v0 = vadd.f32 %v524_v61, %v422_v49 }
 0x251   : > { %v755_v1 = vadd.f32 %v1051_v42, %v533_v60 }
 0x252   : > { %v753_v5 = vadd.f32 %v724_v43, %v525_v0 }
 0x253   : > { %v981_v7 = vpack.c.bf16 %v755_v1, %v754_v59 }
 0x254   : > { %v976_v8 = vpack.c.bf16 %v753_v5, %v752_v63  ;;  %v1032_v9 = vpop.f32.mrb[4].mxu0 }
 0x255   : > { %996 = vst [vmem:[%s284_s28 + $0x8] sm:$0xff] %v981_v7   ;;  %v546_v10 = vadd.f32 %v1032_v9, %v447_v62  ;;  %v537_v11 = vpop.f32.mrb[5].mxu0 }
 0x256   : > { %977 = vst [vmem:[%s284_s28] sm:$0xff] %v976_v8   ;;  %v538_v13 = vadd.f32 %v537_v11, %v437_v51  ;;  %v1033_v15 = vpop.f32.mrb[6].mxu0 }
 0x257   : > { %v758_v16 = vadd.f32 %v1054_v44, %v546_v10  ;;  %v549_v17 = vadd.f32 %v1033_v15, %v452_v12  ;;  %v540_v18 = vpop.f32.mrb[7].mxu0 }
 0x258   : > { %v756_v19 = vadd.f32 %v737_v45, %v538_v13  ;;  %v541_v21 = vadd.f32 %v540_v18, %v442_v52 }
 0x259   : > { %v759_v22 = vadd.f32 %v1055_v46, %v549_v17 }
 0x25a   : > { %v757_v23 = vadd.f32 %v740_v47, %v541_v21 }
 0x25b   : > { %v991_v25 = vpack.c.bf16 %v759_v22, %v758_v16 }
 0x25c   : > { %v986_v26 = vpack.c.bf16 %v757_v23, %v756_v19 }
 0x25d   : > { %998 = vst [vmem:[%s284_s28 + $0x18] sm:$0xff] %v991_v25  }
 0x25e   : > { %997 = vst [vmem:[%s284_s28 + $0x10] sm:$0xff] %v986_v26  }
 0x25f   : > { %1188 = shalt.err (!%p1185_p4)
}
 0x260   : > { %s1189_s14 = scalar_lea.hbm %s1524_s18, 512  ;;  %s1193_s26 = scalar_lea.hbm %s1574_s6, 1024 }
 0x261   : > { %p1190_p5 = scmp.ne.s32.totalorder %s1524_s18, %s1189_s14  ;;  %p1194_p1 = scmp.lt.u32.totalorder %s1524_s18, %s1574_s6 }
 0x262   : > { %p1195_p3 = scmp.lt.u32.totalorder %s1193_s26, %s1189_s14  ;;  %p1197_p6 = scmp.lt.u32.totalorder %s1189_s14, %s1524_s18 }
 0x263   : > { %p1191_p7 = pnand %p1190_p5, %p1581_p12 }
 0x264   : > { %p1196_p11 = por %p1195_p3, %p1194_p1 }
 0x265   : > { %p1192_p9 = pneg %p1191_p7 }
 0x266   : > { %p1198_p13 = por %p1197_p6, %p1196_p11 }
 0x268   : > { %p1199_p8 = pnand %p1198_p13, %p1192_p9 }
 0x26a   : > { %1202 = shalt.err (!%p1199_p8)
}
 0x26b   : > { %s1249_s13 = smov 64   ;;  %s1250_s16 = smov 4  }
 0x26c   : > { %1080 = dma.vmem_to_hbm [thread:$0]  (%p1581_p12), %s1519_s7, 512, %s1524_s18, %s801_s19, %s1249_s13, %s1249_s13, %s1250_s16  }
 0x26d PF: > { %s829_s20 = sand.u32 1, %s1229_s21   ;;  %p1582_p10 = scmp.ne.s32.totalorder %s1579_s10, 0 }
 0x26e   : > { %p1583_p0 = scmp.ge.s32.totalorder %s1241_s24, 2  ;;  %s830_s25 = scalar_lea.sflag [#allocation5], %s829_s20 }
 0x270   : > { %p1087_p2 = pnand %p1583_p0, %p1582_p10 }
 0x272   : > { %1224 = dma.done.wait (!%p1087_p2), %s830_s25, 512  }
 0x273   : > { %1226 = vsyncadd (!%p1087_p2), %s830_s25, 4294966784  ;;  %p19_p4 = scmp.ge.s32.totalorder %s1311_s27, 4   ;;  %s1584_s21 = smov %s1233_s22 }
 0x274   : > { %s1585_s22 = smov %s1237_s23  ;;  %s1586_s23 = smov %s1323_s30 }
 0x275   : > { %s1587_s24 = smov %s1311_s27  ;;  %21 = sbr.rel (!%p19_p4) target bundleno = 5 (0x5), region = 92 }
 0x27c   :  { %835 = vsyncpa [#allocation4], 1 }
 0x27d   :  { %837 = vsyncpa [#allocation4 + $0x1], 1 }
 0x27e   :  { %838 = vsyncpa [#allocation5], 1 }
 0x27f   :  { %840 = vsyncpa [#allocation5 + $0x1], 1 }

</bundles_post_ra>
